<compile_context>
chip_gen: v7x
topology: tpu7x:2x2x1
jax: 0.10.0
libtpu: 0.0.40
codegen_flags: <defaults>
</compile_context>

<pallas_src>
import jax
import jax.numpy as jnp
from jax.experimental import pallas as pl
from jax.experimental.pallas import tpu as pltpu


def _bigru_kernel(xblk_ref, wih_ref, whh_ref, bx_ref, bhn_ref, out_ref, hn_ref):
    """Single-invocation bidirectional GRU.

    xblk_ref: (T*2B, 2I) direction-block inputs:
                rows [s*2B + 0 : s*2B + B]  = [x[s],       0_I ]   (forward)
                rows [s*2B + B : s*2B + 2B] = [0_I,  x[T-1-s] ]   (backward)
    wih_ref:  (2I, 3H) = concat([Wih_fwd, Wih_bwd], axis=0)
    whh_ref:  (2H, 3H) = concat([Whh_fwd, Whh_bwd], axis=0)
    bx_ref:   (2B, 3H) per-row-direction bias (b_ih with b_hh folded for r,z gates)
    bhn_ref:  (2B, H)  per-row-direction b_hh for the n gate (stays inside r*(...))
    out_ref:  (T*B, 2H)
    hn_ref:   (2B, H)
    """
    TB2, _ = xblk_ref.shape
    B2, H = hn_ref.shape          # B2 = 2B
    B = B2 // 2
    T = TB2 // B2
    H2 = 2 * H

    # ---- prologue: one lane-dense MXU matmul for all timesteps & both directions ----
    gx = jnp.dot(xblk_ref[...], wih_ref[...],
                 preferred_element_type=jnp.float32)            # (T*2B, 3H)
    gx = gx.reshape(T, B2, 3 * H) + bx_ref[...][None]           # (T, 2B, 3H)

    whh = whh_ref[...]                                          # (2H, 3H)
    bhn = bhn_ref[...]                                          # (2B, H)

    # Block-diagonal mask: turns the dense (2B, H) carry into the (2B, 2H) blocked
    # operand [h_f | 0] / [0 | h_b] needed by the contraction-stacked weights.
    row = jax.lax.broadcasted_iota(jnp.int32, (B2, H2), 0)
    col = jax.lax.broadcasted_iota(jnp.int32, (B2, H2), 1)
    blkmask = jnp.where(((row < B) & (col < H)) | ((row >= B) & (col >= H)),
                        1.0, 0.0).astype(jnp.float32)           # (2B, 2H)

    # ---- serial recurrence: 1 MXU push + 2 EUP calls per step ----
    h = jnp.zeros((B2, H), jnp.float32)     # rows 0..B-1: forward, B..2B-1: backward
    hs = []
    for s in range(T):                      # static, fully unrolled
        h_blk = jnp.concatenate([h, h], axis=-1) * blkmask      # (2B, 2H)
        gh = jnp.dot(h_blk, whh, preferred_element_type=jnp.float32)  # (2B, 3H)
        gxs = gx[s]                                             # (2B, 3H)
        rz = jax.nn.sigmoid(gxs[:, :H2] + gh[:, :H2])           # merged r|z sigmoid
        r = rz[:, :H]
        z = rz[:, H:]
        n = jnp.tanh(gxs[:, H2:] + r * (gh[:, H2:] + bhn))
        h = (1.0 - z) * n + z * h
        hs.append(h)

    # ---- epilogue: one contiguous write per output ----
    # forward hidden at time t = step t; backward hidden at time t = step T-1-t.
    out_rows = [jnp.concatenate([hs[t][:B, :], hs[T - 1 - t][B:, :]], axis=-1)
                for t in range(T)]
    out_ref[...] = jnp.concatenate(out_rows, axis=0)            # (T*B, 2H)
    hn_ref[...] = hs[T - 1]                                     # (2B, H)


def gru_layer_forward(x, wih_s, whh_s, bih_s, bhh_s):
    """Bidirectional GRU (matches nn.GRU(input_size=I, hidden_size=H, bidirectional=True)).

    Args:
      x:      (T, B, I) float32
      wih_s:  (2, I, 3H)  (= weight_ih_l0{,_reverse}.T, stacked on direction)
      whh_s:  (2, H, 3H)
      bih_s:  (2, 3H)
      bhh_s:  (2, 3H)
    Returns:
      output: (T, B, 2H), h_n: (2, B, H)
    """
    T, B, I = x.shape
    H = whh_s.shape[1]

    # ---- layout plumbing (wrapper-side, outside the kernel) ----
    # Direction-blocked inputs: forward rows carry [x_t, 0], backward rows [0, x_{T-1-t}].
    zeros_x = jnp.zeros_like(x)
    x_fwd = jnp.concatenate([x, zeros_x], axis=-1)              # (T, B, 2I)
    x_bwd = jnp.concatenate([zeros_x, x[::-1]], axis=-1)        # (T, B, 2I)
    x_blk = jnp.concatenate([x_fwd, x_bwd], axis=1)             # (T, 2B, 2I)
    x_blk = x_blk.reshape(T * 2 * B, 2 * I)

    # Contraction-stacked (block-diagonal) weights: one matmul covers both directions.
    wih_blk = jnp.concatenate([wih_s[0], wih_s[1]], axis=0)     # (2I, 3H)
    whh_blk = jnp.concatenate([whh_s[0], whh_s[1]], axis=0)     # (2H, 3H)

    # Fold b_hh into b_ih for the r,z gates; keep b_hh_n separate (inside r*(...)).
    bx_dir = jnp.concatenate(
        [bih_s[:, :2 * H] + bhh_s[:, :2 * H], bih_s[:, 2 * H:]], axis=-1)  # (2, 3H)
    bx_blk = jnp.repeat(bx_dir, B, axis=0)                      # (2B, 3H)
    bhn_blk = jnp.repeat(bhh_s[:, 2 * H:], B, axis=0)           # (2B, H)

    out_flat, hn_flat = pl.pallas_call(
        _bigru_kernel,
        out_shape=(
            jax.ShapeDtypeStruct((T * B, 2 * H), jnp.float32),
            jax.ShapeDtypeStruct((2 * B, H), jnp.float32),
        ),
        grid_spec=pltpu.PrefetchScalarGridSpec(
            num_scalar_prefetch=0,
            grid=(1,),
            in_specs=[
                pl.BlockSpec((T * 2 * B, 2 * I), lambda i: (0, 0)),
                pl.BlockSpec((2 * I, 3 * H), lambda i: (0, 0)),
                pl.BlockSpec((2 * H, 3 * H), lambda i: (0, 0)),
                pl.BlockSpec((2 * B, 3 * H), lambda i: (0, 0)),
                pl.BlockSpec((2 * B, H), lambda i: (0, 0)),
            ],
            out_specs=[
                pl.BlockSpec((T * B, 2 * H), lambda i: (0, 0)),
                pl.BlockSpec((2 * B, H), lambda i: (0, 0)),
            ],
        ),
        compiler_params=pltpu.CompilerParams(
            dimension_semantics=("arbitrary",)),
    )(x_blk, wih_blk, whh_blk, bx_blk, bhn_blk)

    output = out_flat.reshape(T, B, 2 * H)
    h_n = hn_flat.reshape(2, B, H)
    return output, h_n


# ----------------------------- pure-JAX reference -----------------------------
def _gru_cell_ref(h, x_t, wih, whh, bih, bhh, H):
    gx = x_t @ wih + bih
    gh = h @ whh + bhh
    r = jax.nn.sigmoid(gx[:, :H] + gh[:, :H])
    z = jax.nn.sigmoid(gx[:, H:2 * H] + gh[:, H:2 * H])
    n = jnp.tanh(gx[:, 2 * H:] + r * gh[:, 2 * H:])
    return (1.0 - z) * n + z * h


def gru_layer_ref(x, wih_s, whh_s, bih_s, bhh_s):
    T, B, I = x.shape
    H = whh_s.shape[1]

    def run(xs, d):
        def step(h, x_t):
            h_new = _gru_cell_ref(h, x_t, wih_s[d], whh_s[d], bih_s[d], bhh_s[d], H)
            return h_new, h_new
        h_last, ys = jax.lax.scan(step, jnp.zeros((B, H), jnp.float32), xs)
        return h_last, ys

    h_f, y_f = run(x, 0)
    h_b, y_b = run(x[::-1], 1)
    y_b = y_b[::-1]
    output = jnp.concatenate([y_f, y_b], axis=-1)
    h_n = jnp.stack([h_f, h_b], axis=0)
    return output, h_n


# ------------------------------------ main ------------------------------------
if __name__ == "__main__":
    # config.hidden_size = 32 (GRU input size), config.gru_len = 32 (GRU hidden size)
    T, B, I, H = 8, 4, 32, 32

    key = jax.random.PRNGKey(0)
    kx, k1, k2, k3, k4 = jax.random.split(key, 5)

    x = jax.random.normal(kx, (T, B, I), dtype=jnp.float32)

    # Deterministic synthetic parameters (xavier-ish scale), PyTorch shapes transposed:
    # weight_ih_l0 / _reverse: (3H, I) -> stored as (2, I, 3H); weight_hh: (3H, H) -> (2, H, 3H).
    wih_s = jax.random.normal(k1, (2, I, 3 * H), dtype=jnp.float32) * 0.1
    whh_s = jax.random.normal(k2, (2, H, 3 * H), dtype=jnp.float32) * 0.1
    bih_s = jax.random.normal(k3, (2, 3 * H), dtype=jnp.float32) * 0.01
    bhh_s = jax.random.normal(k4, (2, 3 * H), dtype=jnp.float32) * 0.01

    fwd = jax.jit(gru_layer_forward)
    out, h_n = fwd(x, wih_s, whh_s, bih_s, bhh_s)
    jax.block_until_ready((out, h_n))

    out_ref, h_n_ref = gru_layer_ref(x, wih_s, whh_s, bih_s, bhh_s)

    assert out.shape == (T, B, 2 * H), out.shape
    assert h_n.shape == (2, B, H), h_n.shape
    assert jnp.allclose(out, out_ref, atol=1e-5, rtol=1e-5), "output mismatch"
    assert jnp.allclose(h_n, h_n_ref, atol=1e-5, rtol=1e-5), "h_n mismatch"

    print("KERNEL_OK")
</pallas_src>

<mosaic_0001>
module attributes {stable_mosaic.version = 11 : i64} {
  func.func @_bigru_kernel(%arg0: i32, %arg1: memref<64x64xf32, #tpu.memory_space<vmem>>, %arg2: memref<64x96xf32, #tpu.memory_space<vmem>>, %arg3: memref<64x96xf32, #tpu.memory_space<vmem>>, %arg4: memref<8x96xf32, #tpu.memory_space<vmem>>, %arg5: memref<8x32xf32, #tpu.memory_space<vmem>>, %arg6: memref<32x64xf32, #tpu.memory_space<vmem>>, %arg7: memref<8x32xf32, #tpu.memory_space<vmem>>) attributes {dimension_semantics = [#tpu.dimension_semantics<arbitrary>], iteration_bounds = array<i64: 1>, scalar_prefetch = 0 : i64, scratch_operands = 0 : i64, tpu.core_type = #tpu.core_type<tc>, window_params = [{pipeline_mode = #tpu.pipeline_mode<synchronous>, transform_indices = @transform_0, window_bounds = array<i64: 64, 64>}, {pipeline_mode = #tpu.pipeline_mode<synchronous>, transform_indices = @transform_1, window_bounds = array<i64: 64, 96>}, {pipeline_mode = #tpu.pipeline_mode<synchronous>, transform_indices = @transform_2, window_bounds = array<i64: 64, 96>}, {pipeline_mode = #tpu.pipeline_mode<synchronous>, transform_indices = @transform_3, window_bounds = array<i64: 8, 96>}, {pipeline_mode = #tpu.pipeline_mode<synchronous>, transform_indices = @transform_4, window_bounds = array<i64: 8, 32>}, {pipeline_mode = #tpu.pipeline_mode<synchronous>, transform_indices = @transform_5, window_bounds = array<i64: 32, 64>}, {pipeline_mode = #tpu.pipeline_mode<synchronous>, transform_indices = @transform_6, window_bounds = array<i64: 8, 32>}]} {
    %c0 = arith.constant 0 : index
    %c0_0 = arith.constant 0 : index
    %0 = vector.load %arg1[%c0, %c0_0] : memref<64x64xf32, #tpu.memory_space<vmem>>, vector<64x64xf32>
    %c0_1 = arith.constant 0 : index
    %c0_2 = arith.constant 0 : index
    %1 = vector.load %arg2[%c0_1, %c0_2] : memref<64x96xf32, #tpu.memory_space<vmem>>, vector<64x96xf32>
    %cst = arith.constant dense<0.000000e+00> : vector<64x96xf32>
    %2 = tpu.matmul %0, %1, %cst {dimension_numbers = #tpu.dot_dimension_numbers<[1], [0], [0], [1], [0, 0, 1, 1], [], []>} : vector<64x64xf32>, vector<64x96xf32>, vector<64x96xf32> -> vector<64x96xf32>
    %3 = vector.shape_cast %2 : vector<64x96xf32> to vector<8x8x96xf32>
    %c0_3 = arith.constant 0 : index
    %c0_4 = arith.constant 0 : index
    %4 = vector.load %arg4[%c0_3, %c0_4] : memref<8x96xf32, #tpu.memory_space<vmem>>, vector<8x96xf32>
    %5 = vector.shape_cast %4 : vector<8x96xf32> to vector<1x8x96xf32>
    %6 = vector.broadcast %5 : vector<1x8x96xf32> to vector<8x8x96xf32>
    %7 = arith.addf %3, %6 : vector<8x8x96xf32>
    %c0_5 = arith.constant 0 : index
    %c0_6 = arith.constant 0 : index
    %8 = vector.load %arg3[%c0_5, %c0_6] : memref<64x96xf32, #tpu.memory_space<vmem>>, vector<64x96xf32>
    %c0_7 = arith.constant 0 : index
    %c0_8 = arith.constant 0 : index
    %9 = vector.load %arg5[%c0_7, %c0_8] : memref<8x32xf32, #tpu.memory_space<vmem>>, vector<8x32xf32>
    %10 = tpu.iota {dimensions = array<i32: 0>} : vector<8x64xi32>
    %11 = tpu.iota {dimensions = array<i32: 1>} : vector<8x64xi32>
    %c4_i32 = arith.constant 4 : i32
    %12 = vector.broadcast %c4_i32 : i32 to vector<8x64xi32>
    %13 = arith.cmpi slt, %10, %12 : vector<8x64xi32>
    %c32_i32 = arith.constant 32 : i32
    %14 = vector.broadcast %c32_i32 : i32 to vector<8x64xi32>
    %15 = arith.cmpi slt, %11, %14 : vector<8x64xi32>
    %16 = arith.andi %13, %15 : vector<8x64xi1>
    %c4_i32_9 = arith.constant 4 : i32
    %17 = vector.broadcast %c4_i32_9 : i32 to vector<8x64xi32>
    %18 = arith.cmpi sge, %10, %17 : vector<8x64xi32>
    %c32_i32_10 = arith.constant 32 : i32
    %19 = vector.broadcast %c32_i32_10 : i32 to vector<8x64xi32>
    %20 = arith.cmpi sge, %11, %19 : vector<8x64xi32>
    %21 = arith.andi %18, %20 : vector<8x64xi1>
    %22 = arith.ori %16, %21 : vector<8x64xi1>
    %cst_11 = arith.constant 1.000000e+00 : f32
    %cst_12 = arith.constant 0.000000e+00 : f32
    %23 = vector.broadcast %cst_11 : f32 to vector<8x64xf32>
    %24 = vector.broadcast %cst_12 : f32 to vector<8x64xf32>
    %25 = arith.select %22, %23, %24 : vector<8x64xi1>, vector<8x64xf32>
    %cst_13 = arith.constant 0.000000e+00 : f32
    %26 = vector.broadcast %cst_13 : f32 to vector<8x32xf32>
    %27 = tpu.concatenate %26, %26 in 1 : vector<8x32xf32>, vector<8x32xf32> -> vector<8x64xf32>
    %28 = arith.mulf %27, %25 : vector<8x64xf32>
    %cst_14 = arith.constant dense<0.000000e+00> : vector<8x96xf32>
    %29 = tpu.matmul %28, %8, %cst_14 {dimension_numbers = #tpu.dot_dimension_numbers<[1], [0], [0], [1], [0, 0, 1, 1], [], []>} : vector<8x64xf32>, vector<64x96xf32>, vector<8x96xf32> -> vector<8x96xf32>
    %30 = vector.extract_strided_slice %7 {offsets = [0, 0, 0], sizes = [1, 8, 96], strides = [1, 1, 1]} : vector<8x8x96xf32> to vector<1x8x96xf32>
    %31 = vector.shape_cast %30 : vector<1x8x96xf32> to vector<8x96xf32>
    %32 = vector.extract_strided_slice %31 {offsets = [0, 0], sizes = [8, 64], strides = [1, 1]} : vector<8x96xf32> to vector<8x64xf32>
    %33 = vector.extract_strided_slice %29 {offsets = [0, 0], sizes = [8, 64], strides = [1, 1]} : vector<8x96xf32> to vector<8x64xf32>
    %34 = arith.addf %32, %33 : vector<8x64xf32>
    %35 = arith.negf %34 : vector<8x64xf32>
    %36 = math.exp %35 : vector<8x64xf32>
    %cst_15 = arith.constant 1.000000e+00 : f32
    %37 = vector.broadcast %cst_15 : f32 to vector<8x64xf32>
    %38 = arith.addf %37, %36 : vector<8x64xf32>
    %39 = arith.divf %37, %38 : vector<8x64xf32>
    %40 = vector.extract_strided_slice %39 {offsets = [0, 0], sizes = [8, 32], strides = [1, 1]} : vector<8x64xf32> to vector<8x32xf32>
    %41 = vector.extract_strided_slice %39 {offsets = [0, 32], sizes = [8, 32], strides = [1, 1]} : vector<8x64xf32> to vector<8x32xf32>
    %42 = vector.extract_strided_slice %31 {offsets = [0, 64], sizes = [8, 32], strides = [1, 1]} : vector<8x96xf32> to vector<8x32xf32>
    %43 = vector.extract_strided_slice %29 {offsets = [0, 64], sizes = [8, 32], strides = [1, 1]} : vector<8x96xf32> to vector<8x32xf32>
    %44 = arith.addf %43, %9 : vector<8x32xf32>
    %45 = arith.mulf %40, %44 : vector<8x32xf32>
    %46 = arith.addf %42, %45 : vector<8x32xf32>
    %47 = math.tanh %46 : vector<8x32xf32>
    %cst_16 = arith.constant 1.000000e+00 : f32
    %48 = vector.broadcast %cst_16 : f32 to vector<8x32xf32>
    %49 = arith.subf %48, %41 : vector<8x32xf32>
    %50 = arith.mulf %49, %47 : vector<8x32xf32>
    %51 = arith.mulf %41, %26 : vector<8x32xf32>
    %52 = arith.addf %50, %51 : vector<8x32xf32>
    %53 = tpu.concatenate %52, %52 in 1 : vector<8x32xf32>, vector<8x32xf32> -> vector<8x64xf32>
    %54 = arith.mulf %53, %25 : vector<8x64xf32>
    %cst_17 = arith.constant dense<0.000000e+00> : vector<8x96xf32>
    %55 = tpu.matmul %54, %8, %cst_17 {dimension_numbers = #tpu.dot_dimension_numbers<[1], [0], [0], [1], [0, 0, 1, 1], [], []>} : vector<8x64xf32>, vector<64x96xf32>, vector<8x96xf32> -> vector<8x96xf32>
    %56 = vector.extract_strided_slice %7 {offsets = [1, 0, 0], sizes = [1, 8, 96], strides = [1, 1, 1]} : vector<8x8x96xf32> to vector<1x8x96xf32>
    %57 = vector.shape_cast %56 : vector<1x8x96xf32> to vector<8x96xf32>
    %58 = vector.extract_strided_slice %57 {offsets = [0, 0], sizes = [8, 64], strides = [1, 1]} : vector<8x96xf32> to vector<8x64xf32>
    %59 = vector.extract_strided_slice %55 {offsets = [0, 0], sizes = [8, 64], strides = [1, 1]} : vector<8x96xf32> to vector<8x64xf32>
    %60 = arith.addf %58, %59 : vector<8x64xf32>
    %61 = arith.negf %60 : vector<8x64xf32>
    %62 = math.exp %61 : vector<8x64xf32>
    %cst_18 = arith.constant 1.000000e+00 : f32
    %63 = vector.broadcast %cst_18 : f32 to vector<8x64xf32>
    %64 = arith.addf %63, %62 : vector<8x64xf32>
    %65 = arith.divf %63, %64 : vector<8x64xf32>
    %66 = vector.extract_strided_slice %65 {offsets = [0, 0], sizes = [8, 32], strides = [1, 1]} : vector<8x64xf32> to vector<8x32xf32>
    %67 = vector.extract_strided_slice %65 {offsets = [0, 32], sizes = [8, 32], strides = [1, 1]} : vector<8x64xf32> to vector<8x32xf32>
    %68 = vector.extract_strided_slice %57 {offsets = [0, 64], sizes = [8, 32], strides = [1, 1]} : vector<8x96xf32> to vector<8x32xf32>
    %69 = vector.extract_strided_slice %55 {offsets = [0, 64], sizes = [8, 32], strides = [1, 1]} : vector<8x96xf32> to vector<8x32xf32>
    %70 = arith.addf %69, %9 : vector<8x32xf32>
    %71 = arith.mulf %66, %70 : vector<8x32xf32>
    %72 = arith.addf %68, %71 : vector<8x32xf32>
    %73 = math.tanh %72 : vector<8x32xf32>
    %cst_19 = arith.constant 1.000000e+00 : f32
    %74 = vector.broadcast %cst_19 : f32 to vector<8x32xf32>
    %75 = arith.subf %74, %67 : vector<8x32xf32>
    %76 = arith.mulf %75, %73 : vector<8x32xf32>
    %77 = arith.mulf %67, %52 : vector<8x32xf32>
    %78 = arith.addf %76, %77 : vector<8x32xf32>
    %79 = tpu.concatenate %78, %78 in 1 : vector<8x32xf32>, vector<8x32xf32> -> vector<8x64xf32>
    %80 = arith.mulf %79, %25 : vector<8x64xf32>
    %cst_20 = arith.constant dense<0.000000e+00> : vector<8x96xf32>
    %81 = tpu.matmul %80, %8, %cst_20 {dimension_numbers = #tpu.dot_dimension_numbers<[1], [0], [0], [1], [0, 0, 1, 1], [], []>} : vector<8x64xf32>, vector<64x96xf32>, vector<8x96xf32> -> vector<8x96xf32>
    %82 = vector.extract_strided_slice %7 {offsets = [2, 0, 0], sizes = [1, 8, 96], strides = [1, 1, 1]} : vector<8x8x96xf32> to vector<1x8x96xf32>
    %83 = vector.shape_cast %82 : vector<1x8x96xf32> to vector<8x96xf32>
    %84 = vector.extract_strided_slice %83 {offsets = [0, 0], sizes = [8, 64], strides = [1, 1]} : vector<8x96xf32> to vector<8x64xf32>
    %85 = vector.extract_strided_slice %81 {offsets = [0, 0], sizes = [8, 64], strides = [1, 1]} : vector<8x96xf32> to vector<8x64xf32>
    %86 = arith.addf %84, %85 : vector<8x64xf32>
    %87 = arith.negf %86 : vector<8x64xf32>
    %88 = math.exp %87 : vector<8x64xf32>
    %cst_21 = arith.constant 1.000000e+00 : f32
    %89 = vector.broadcast %cst_21 : f32 to vector<8x64xf32>
    %90 = arith.addf %89, %88 : vector<8x64xf32>
    %91 = arith.divf %89, %90 : vector<8x64xf32>
    %92 = vector.extract_strided_slice %91 {offsets = [0, 0], sizes = [8, 32], strides = [1, 1]} : vector<8x64xf32> to vector<8x32xf32>
    %93 = vector.extract_strided_slice %91 {offsets = [0, 32], sizes = [8, 32], strides = [1, 1]} : vector<8x64xf32> to vector<8x32xf32>
    %94 = vector.extract_strided_slice %83 {offsets = [0, 64], sizes = [8, 32], strides = [1, 1]} : vector<8x96xf32> to vector<8x32xf32>
    %95 = vector.extract_strided_slice %81 {offsets = [0, 64], sizes = [8, 32], strides = [1, 1]} : vector<8x96xf32> to vector<8x32xf32>
    %96 = arith.addf %95, %9 : vector<8x32xf32>
    %97 = arith.mulf %92, %96 : vector<8x32xf32>
    %98 = arith.addf %94, %97 : vector<8x32xf32>
    %99 = math.tanh %98 : vector<8x32xf32>
    %cst_22 = arith.constant 1.000000e+00 : f32
    %100 = vector.broadcast %cst_22 : f32 to vector<8x32xf32>
    %101 = arith.subf %100, %93 : vector<8x32xf32>
    %102 = arith.mulf %101, %99 : vector<8x32xf32>
    %103 = arith.mulf %93, %78 : vector<8x32xf32>
    %104 = arith.addf %102, %103 : vector<8x32xf32>
    %105 = tpu.concatenate %104, %104 in 1 : vector<8x32xf32>, vector<8x32xf32> -> vector<8x64xf32>
    %106 = arith.mulf %105, %25 : vector<8x64xf32>
    %cst_23 = arith.constant dense<0.000000e+00> : vector<8x96xf32>
    %107 = tpu.matmul %106, %8, %cst_23 {dimension_numbers = #tpu.dot_dimension_numbers<[1], [0], [0], [1], [0, 0, 1, 1], [], []>} : vector<8x64xf32>, vector<64x96xf32>, vector<8x96xf32> -> vector<8x96xf32>
    %108 = vector.extract_strided_slice %7 {offsets = [3, 0, 0], sizes = [1, 8, 96], strides = [1, 1, 1]} : vector<8x8x96xf32> to vector<1x8x96xf32>
    %109 = vector.shape_cast %108 : vector<1x8x96xf32> to vector<8x96xf32>
    %110 = vector.extract_strided_slice %109 {offsets = [0, 0], sizes = [8, 64], strides = [1, 1]} : vector<8x96xf32> to vector<8x64xf32>
    %111 = vector.extract_strided_slice %107 {offsets = [0, 0], sizes = [8, 64], strides = [1, 1]} : vector<8x96xf32> to vector<8x64xf32>
    %112 = arith.addf %110, %111 : vector<8x64xf32>
    %113 = arith.negf %112 : vector<8x64xf32>
    %114 = math.exp %113 : vector<8x64xf32>
    %cst_24 = arith.constant 1.000000e+00 : f32
    %115 = vector.broadcast %cst_24 : f32 to vector<8x64xf32>
    %116 = arith.addf %115, %114 : vector<8x64xf32>
    %117 = arith.divf %115, %116 : vector<8x64xf32>
    %118 = vector.extract_strided_slice %117 {offsets = [0, 0], sizes = [8, 32], strides = [1, 1]} : vector<8x64xf32> to vector<8x32xf32>
    %119 = vector.extract_strided_slice %117 {offsets = [0, 32], sizes = [8, 32], strides = [1, 1]} : vector<8x64xf32> to vector<8x32xf32>
    %120 = vector.extract_strided_slice %109 {offsets = [0, 64], sizes = [8, 32], strides = [1, 1]} : vector<8x96xf32> to vector<8x32xf32>
    %121 = vector.extract_strided_slice %107 {offsets = [0, 64], sizes = [8, 32], strides = [1, 1]} : vector<8x96xf32> to vector<8x32xf32>
    %122 = arith.addf %121, %9 : vector<8x32xf32>
    %123 = arith.mulf %118, %122 : vector<8x32xf32>
    %124 = arith.addf %120, %123 : vector<8x32xf32>
    %125 = math.tanh %124 : vector<8x32xf32>
    %cst_25 = arith.constant 1.000000e+00 : f32
    %126 = vector.broadcast %cst_25 : f32 to vector<8x32xf32>
    %127 = arith.subf %126, %119 : vector<8x32xf32>
    %128 = arith.mulf %127, %125 : vector<8x32xf32>
    %129 = arith.mulf %119, %104 : vector<8x32xf32>
    %130 = arith.addf %128, %129 : vector<8x32xf32>
    %131 = tpu.concatenate %130, %130 in 1 : vector<8x32xf32>, vector<8x32xf32> -> vector<8x64xf32>
    %132 = arith.mulf %131, %25 : vector<8x64xf32>
    %cst_26 = arith.constant dense<0.000000e+00> : vector<8x96xf32>
    %133 = tpu.matmul %132, %8, %cst_26 {dimension_numbers = #tpu.dot_dimension_numbers<[1], [0], [0], [1], [0, 0, 1, 1], [], []>} : vector<8x64xf32>, vector<64x96xf32>, vector<8x96xf32> -> vector<8x96xf32>
    %134 = vector.extract_strided_slice %7 {offsets = [4, 0, 0], sizes = [1, 8, 96], strides = [1, 1, 1]} : vector<8x8x96xf32> to vector<1x8x96xf32>
    %135 = vector.shape_cast %134 : vector<1x8x96xf32> to vector<8x96xf32>
    %136 = vector.extract_strided_slice %135 {offsets = [0, 0], sizes = [8, 64], strides = [1, 1]} : vector<8x96xf32> to vector<8x64xf32>
    %137 = vector.extract_strided_slice %133 {offsets = [0, 0], sizes = [8, 64], strides = [1, 1]} : vector<8x96xf32> to vector<8x64xf32>
    %138 = arith.addf %136, %137 : vector<8x64xf32>
    %139 = arith.negf %138 : vector<8x64xf32>
    %140 = math.exp %139 : vector<8x64xf32>
    %cst_27 = arith.constant 1.000000e+00 : f32
    %141 = vector.broadcast %cst_27 : f32 to vector<8x64xf32>
    %142 = arith.addf %141, %140 : vector<8x64xf32>
    %143 = arith.divf %141, %142 : vector<8x64xf32>
    %144 = vector.extract_strided_slice %143 {offsets = [0, 0], sizes = [8, 32], strides = [1, 1]} : vector<8x64xf32> to vector<8x32xf32>
    %145 = vector.extract_strided_slice %143 {offsets = [0, 32], sizes = [8, 32], strides = [1, 1]} : vector<8x64xf32> to vector<8x32xf32>
    %146 = vector.extract_strided_slice %135 {offsets = [0, 64], sizes = [8, 32], strides = [1, 1]} : vector<8x96xf32> to vector<8x32xf32>
    %147 = vector.extract_strided_slice %133 {offsets = [0, 64], sizes = [8, 32], strides = [1, 1]} : vector<8x96xf32> to vector<8x32xf32>
    %148 = arith.addf %147, %9 : vector<8x32xf32>
    %149 = arith.mulf %144, %148 : vector<8x32xf32>
    %150 = arith.addf %146, %149 : vector<8x32xf32>
    %151 = math.tanh %150 : vector<8x32xf32>
    %cst_28 = arith.constant 1.000000e+00 : f32
    %152 = vector.broadcast %cst_28 : f32 to vector<8x32xf32>
    %153 = arith.subf %152, %145 : vector<8x32xf32>
    %154 = arith.mulf %153, %151 : vector<8x32xf32>
    %155 = arith.mulf %145, %130 : vector<8x32xf32>
    %156 = arith.addf %154, %155 : vector<8x32xf32>
    %157 = tpu.concatenate %156, %156 in 1 : vector<8x32xf32>, vector<8x32xf32> -> vector<8x64xf32>
    %158 = arith.mulf %157, %25 : vector<8x64xf32>
    %cst_29 = arith.constant dense<0.000000e+00> : vector<8x96xf32>
    %159 = tpu.matmul %158, %8, %cst_29 {dimension_numbers = #tpu.dot_dimension_numbers<[1], [0], [0], [1], [0, 0, 1, 1], [], []>} : vector<8x64xf32>, vector<64x96xf32>, vector<8x96xf32> -> vector<8x96xf32>
    %160 = vector.extract_strided_slice %7 {offsets = [5, 0, 0], sizes = [1, 8, 96], strides = [1, 1, 1]} : vector<8x8x96xf32> to vector<1x8x96xf32>
    %161 = vector.shape_cast %160 : vector<1x8x96xf32> to vector<8x96xf32>
    %162 = vector.extract_strided_slice %161 {offsets = [0, 0], sizes = [8, 64], strides = [1, 1]} : vector<8x96xf32> to vector<8x64xf32>
    %163 = vector.extract_strided_slice %159 {offsets = [0, 0], sizes = [8, 64], strides = [1, 1]} : vector<8x96xf32> to vector<8x64xf32>
    %164 = arith.addf %162, %163 : vector<8x64xf32>
    %165 = arith.negf %164 : vector<8x64xf32>
    %166 = math.exp %165 : vector<8x64xf32>
    %cst_30 = arith.constant 1.000000e+00 : f32
    %167 = vector.broadcast %cst_30 : f32 to vector<8x64xf32>
    %168 = arith.addf %167, %166 : vector<8x64xf32>
    %169 = arith.divf %167, %168 : vector<8x64xf32>
    %170 = vector.extract_strided_slice %169 {offsets = [0, 0], sizes = [8, 32], strides = [1, 1]} : vector<8x64xf32> to vector<8x32xf32>
    %171 = vector.extract_strided_slice %169 {offsets = [0, 32], sizes = [8, 32], strides = [1, 1]} : vector<8x64xf32> to vector<8x32xf32>
    %172 = vector.extract_strided_slice %161 {offsets = [0, 64], sizes = [8, 32], strides = [1, 1]} : vector<8x96xf32> to vector<8x32xf32>
    %173 = vector.extract_strided_slice %159 {offsets = [0, 64], sizes = [8, 32], strides = [1, 1]} : vector<8x96xf32> to vector<8x32xf32>
    %174 = arith.addf %173, %9 : vector<8x32xf32>
    %175 = arith.mulf %170, %174 : vector<8x32xf32>
    %176 = arith.addf %172, %175 : vector<8x32xf32>
    %177 = math.tanh %176 : vector<8x32xf32>
    %cst_31 = arith.constant 1.000000e+00 : f32
    %178 = vector.broadcast %cst_31 : f32 to vector<8x32xf32>
    %179 = arith.subf %178, %171 : vector<8x32xf32>
    %180 = arith.mulf %179, %177 : vector<8x32xf32>
    %181 = arith.mulf %171, %156 : vector<8x32xf32>
    %182 = arith.addf %180, %181 : vector<8x32xf32>
    %183 = tpu.concatenate %182, %182 in 1 : vector<8x32xf32>, vector<8x32xf32> -> vector<8x64xf32>
    %184 = arith.mulf %183, %25 : vector<8x64xf32>
    %cst_32 = arith.constant dense<0.000000e+00> : vector<8x96xf32>
    %185 = tpu.matmul %184, %8, %cst_32 {dimension_numbers = #tpu.dot_dimension_numbers<[1], [0], [0], [1], [0, 0, 1, 1], [], []>} : vector<8x64xf32>, vector<64x96xf32>, vector<8x96xf32> -> vector<8x96xf32>
    %186 = vector.extract_strided_slice %7 {offsets = [6, 0, 0], sizes = [1, 8, 96], strides = [1, 1, 1]} : vector<8x8x96xf32> to vector<1x8x96xf32>
    %187 = vector.shape_cast %186 : vector<1x8x96xf32> to vector<8x96xf32>
    %188 = vector.extract_strided_slice %187 {offsets = [0, 0], sizes = [8, 64], strides = [1, 1]} : vector<8x96xf32> to vector<8x64xf32>
    %189 = vector.extract_strided_slice %185 {offsets = [0, 0], sizes = [8, 64], strides = [1, 1]} : vector<8x96xf32> to vector<8x64xf32>
    %190 = arith.addf %188, %189 : vector<8x64xf32>
    %191 = arith.negf %190 : vector<8x64xf32>
    %192 = math.exp %191 : vector<8x64xf32>
    %cst_33 = arith.constant 1.000000e+00 : f32
    %193 = vector.broadcast %cst_33 : f32 to vector<8x64xf32>
    %194 = arith.addf %193, %192 : vector<8x64xf32>
    %195 = arith.divf %193, %194 : vector<8x64xf32>
    %196 = vector.extract_strided_slice %195 {offsets = [0, 0], sizes = [8, 32], strides = [1, 1]} : vector<8x64xf32> to vector<8x32xf32>
    %197 = vector.extract_strided_slice %195 {offsets = [0, 32], sizes = [8, 32], strides = [1, 1]} : vector<8x64xf32> to vector<8x32xf32>
    %198 = vector.extract_strided_slice %187 {offsets = [0, 64], sizes = [8, 32], strides = [1, 1]} : vector<8x96xf32> to vector<8x32xf32>
    %199 = vector.extract_strided_slice %185 {offsets = [0, 64], sizes = [8, 32], strides = [1, 1]} : vector<8x96xf32> to vector<8x32xf32>
    %200 = arith.addf %199, %9 : vector<8x32xf32>
    %201 = arith.mulf %196, %200 : vector<8x32xf32>
    %202 = arith.addf %198, %201 : vector<8x32xf32>
    %203 = math.tanh %202 : vector<8x32xf32>
    %cst_34 = arith.constant 1.000000e+00 : f32
    %204 = vector.broadcast %cst_34 : f32 to vector<8x32xf32>
    %205 = arith.subf %204, %197 : vector<8x32xf32>
    %206 = arith.mulf %205, %203 : vector<8x32xf32>
    %207 = arith.mulf %197, %182 : vector<8x32xf32>
    %208 = arith.addf %206, %207 : vector<8x32xf32>
    %209 = tpu.concatenate %208, %208 in 1 : vector<8x32xf32>, vector<8x32xf32> -> vector<8x64xf32>
    %210 = arith.mulf %209, %25 : vector<8x64xf32>
    %cst_35 = arith.constant dense<0.000000e+00> : vector<8x96xf32>
    %211 = tpu.matmul %210, %8, %cst_35 {dimension_numbers = #tpu.dot_dimension_numbers<[1], [0], [0], [1], [0, 0, 1, 1], [], []>} : vector<8x64xf32>, vector<64x96xf32>, vector<8x96xf32> -> vector<8x96xf32>
    %212 = vector.extract_strided_slice %7 {offsets = [7, 0, 0], sizes = [1, 8, 96], strides = [1, 1, 1]} : vector<8x8x96xf32> to vector<1x8x96xf32>
    %213 = vector.shape_cast %212 : vector<1x8x96xf32> to vector<8x96xf32>
    %214 = vector.extract_strided_slice %213 {offsets = [0, 0], sizes = [8, 64], strides = [1, 1]} : vector<8x96xf32> to vector<8x64xf32>
    %215 = vector.extract_strided_slice %211 {offsets = [0, 0], sizes = [8, 64], strides = [1, 1]} : vector<8x96xf32> to vector<8x64xf32>
    %216 = arith.addf %214, %215 : vector<8x64xf32>
    %217 = arith.negf %216 : vector<8x64xf32>
    %218 = math.exp %217 : vector<8x64xf32>
    %cst_36 = arith.constant 1.000000e+00 : f32
    %219 = vector.broadcast %cst_36 : f32 to vector<8x64xf32>
    %220 = arith.addf %219, %218 : vector<8x64xf32>
    %221 = arith.divf %219, %220 : vector<8x64xf32>
    %222 = vector.extract_strided_slice %221 {offsets = [0, 0], sizes = [8, 32], strides = [1, 1]} : vector<8x64xf32> to vector<8x32xf32>
    %223 = vector.extract_strided_slice %221 {offsets = [0, 32], sizes = [8, 32], strides = [1, 1]} : vector<8x64xf32> to vector<8x32xf32>
    %224 = vector.extract_strided_slice %213 {offsets = [0, 64], sizes = [8, 32], strides = [1, 1]} : vector<8x96xf32> to vector<8x32xf32>
    %225 = vector.extract_strided_slice %211 {offsets = [0, 64], sizes = [8, 32], strides = [1, 1]} : vector<8x96xf32> to vector<8x32xf32>
    %226 = arith.addf %225, %9 : vector<8x32xf32>
    %227 = arith.mulf %222, %226 : vector<8x32xf32>
    %228 = arith.addf %224, %227 : vector<8x32xf32>
    %229 = math.tanh %228 : vector<8x32xf32>
    %cst_37 = arith.constant 1.000000e+00 : f32
    %230 = vector.broadcast %cst_37 : f32 to vector<8x32xf32>
    %231 = arith.subf %230, %223 : vector<8x32xf32>
    %232 = arith.mulf %231, %229 : vector<8x32xf32>
    %233 = arith.mulf %223, %208 : vector<8x32xf32>
    %234 = arith.addf %232, %233 : vector<8x32xf32>
    %235 = vector.extract_strided_slice %52 {offsets = [0, 0], sizes = [4, 32], strides = [1, 1]} : vector<8x32xf32> to vector<4x32xf32>
    %236 = vector.extract_strided_slice %234 {offsets = [4, 0], sizes = [4, 32], strides = [1, 1]} : vector<8x32xf32> to vector<4x32xf32>
    %237 = tpu.concatenate %235, %236 in 1 : vector<4x32xf32>, vector<4x32xf32> -> vector<4x64xf32>
    %238 = vector.extract_strided_slice %78 {offsets = [0, 0], sizes = [4, 32], strides = [1, 1]} : vector<8x32xf32> to vector<4x32xf32>
    %239 = vector.extract_strided_slice %208 {offsets = [4, 0], sizes = [4, 32], strides = [1, 1]} : vector<8x32xf32> to vector<4x32xf32>
    %240 = tpu.concatenate %238, %239 in 1 : vector<4x32xf32>, vector<4x32xf32> -> vector<4x64xf32>
    %241 = vector.extract_strided_slice %104 {offsets = [0, 0], sizes = [4, 32], strides = [1, 1]} : vector<8x32xf32> to vector<4x32xf32>
    %242 = vector.extract_strided_slice %182 {offsets = [4, 0], sizes = [4, 32], strides = [1, 1]} : vector<8x32xf32> to vector<4x32xf32>
    %243 = tpu.concatenate %241, %242 in 1 : vector<4x32xf32>, vector<4x32xf32> -> vector<4x64xf32>
    %244 = vector.extract_strided_slice %130 {offsets = [0, 0], sizes = [4, 32], strides = [1, 1]} : vector<8x32xf32> to vector<4x32xf32>
    %245 = vector.extract_strided_slice %156 {offsets = [4, 0], sizes = [4, 32], strides = [1, 1]} : vector<8x32xf32> to vector<4x32xf32>
    %246 = tpu.concatenate %244, %245 in 1 : vector<4x32xf32>, vector<4x32xf32> -> vector<4x64xf32>
    %247 = vector.extract_strided_slice %156 {offsets = [0, 0], sizes = [4, 32], strides = [1, 1]} : vector<8x32xf32> to vector<4x32xf32>
    %248 = vector.extract_strided_slice %130 {offsets = [4, 0], sizes = [4, 32], strides = [1, 1]} : vector<8x32xf32> to vector<4x32xf32>
    %249 = tpu.concatenate %247, %248 in 1 : vector<4x32xf32>, vector<4x32xf32> -> vector<4x64xf32>
    %250 = vector.extract_strided_slice %182 {offsets = [0, 0], sizes = [4, 32], strides = [1, 1]} : vector<8x32xf32> to vector<4x32xf32>
    %251 = vector.extract_strided_slice %104 {offsets = [4, 0], sizes = [4, 32], strides = [1, 1]} : vector<8x32xf32> to vector<4x32xf32>
    %252 = tpu.concatenate %250, %251 in 1 : vector<4x32xf32>, vector<4x32xf32> -> vector<4x64xf32>
    %253 = vector.extract_strided_slice %208 {offsets = [0, 0], sizes = [4, 32], strides = [1, 1]} : vector<8x32xf32> to vector<4x32xf32>
    %254 = vector.extract_strided_slice %78 {offsets = [4, 0], sizes = [4, 32], strides = [1, 1]} : vector<8x32xf32> to vector<4x32xf32>
    %255 = tpu.concatenate %253, %254 in 1 : vector<4x32xf32>, vector<4x32xf32> -> vector<4x64xf32>
    %256 = vector.extract_strided_slice %234 {offsets = [0, 0], sizes = [4, 32], strides = [1, 1]} : vector<8x32xf32> to vector<4x32xf32>
    %257 = vector.extract_strided_slice %52 {offsets = [4, 0], sizes = [4, 32], strides = [1, 1]} : vector<8x32xf32> to vector<4x32xf32>
    %258 = tpu.concatenate %256, %257 in 1 : vector<4x32xf32>, vector<4x32xf32> -> vector<4x64xf32>
    %259 = tpu.concatenate %237, %240, %243, %246, %249, %252, %255, %258 in 0 : vector<4x64xf32>, vector<4x64xf32>, vector<4x64xf32>, vector<4x64xf32>, vector<4x64xf32>, vector<4x64xf32>, vector<4x64xf32>, vector<4x64xf32> -> vector<32x64xf32>
    %c0_38 = arith.constant 0 : index
    %c0_39 = arith.constant 0 : index
    %260 = vector.load %arg6[%c0_38, %c0_39] : memref<32x64xf32, #tpu.memory_space<vmem>>, vector<32x64xf32>
    tpu.vector_store %arg6[%c0_38, %c0_39], %259 {strides = array<i32>} : memref<32x64xf32, #tpu.memory_space<vmem>>, vector<32x64xf32>,
    %c0_40 = arith.constant 0 : index
    %c0_41 = arith.constant 0 : index
    %261 = vector.load %arg7[%c0_40, %c0_41] : memref<8x32xf32, #tpu.memory_space<vmem>>, vector<8x32xf32>
    tpu.vector_store %arg7[%c0_40, %c0_41], %234 {strides = array<i32>} : memref<8x32xf32, #tpu.memory_space<vmem>>, vector<8x32xf32>,
    return
  }
  func.func @transform_0(%arg0: i32) -> (i32, i32) {
    %c0_i32 = arith.constant 0 : i32
    %c0_i32_0 = arith.constant 0 : i32
    %c0_i32_1 = arith.constant 0 : i32
    return %c0_i32, %c0_i32_0 : i32, i32
  }
  func.func @transform_1(%arg0: i32) -> (i32, i32) {
    %c0_i32 = arith.constant 0 : i32
    %c0_i32_0 = arith.constant 0 : i32
    %c0_i32_1 = arith.constant 0 : i32
    return %c0_i32, %c0_i32_0 : i32, i32
  }
  func.func @transform_2(%arg0: i32) -> (i32, i32) {
    %c0_i32 = arith.constant 0 : i32
    %c0_i32_0 = arith.constant 0 : i32
    %c0_i32_1 = arith.constant 0 : i32
    return %c0_i32, %c0_i32_0 : i32, i32
  }
  func.func @transform_3(%arg0: i32) -> (i32, i32) {
    %c0_i32 = arith.constant 0 : i32
    %c0_i32_0 = arith.constant 0 : i32
    %c0_i32_1 = arith.constant 0 : i32
    return %c0_i32, %c0_i32_0 : i32, i32
  }
  func.func @transform_4(%arg0: i32) -> (i32, i32) {
    %c0_i32 = arith.constant 0 : i32
    %c0_i32_0 = arith.constant 0 : i32
    %c0_i32_1 = arith.constant 0 : i32
    return %c0_i32, %c0_i32_0 : i32, i32
  }
  func.func @transform_5(%arg0: i32) -> (i32, i32) {
    %c0_i32 = arith.constant 0 : i32
    %c0_i32_0 = arith.constant 0 : i32
    %c0_i32_1 = arith.constant 0 : i32
    return %c0_i32, %c0_i32_0 : i32, i32
  }
  func.func @transform_6(%arg0: i32) -> (i32, i32) {
    %c0_i32 = arith.constant 0 : i32
    %c0_i32_0 = arith.constant 0 : i32
    %c0_i32_1 = arith.constant 0 : i32
    return %c0_i32, %c0_i32_0 : i32, i32
  }
}

</mosaic_0001>

<bundles_post_ra>
// kernel: gru_layer_forward.1
= control target key start
LH: loop header
LB: loop body
LE: loop exit
PB: predicated region body
PF: predicated region fallthrough
CT: control target
= control target key end

     0   :  { %12 = vsyncpa [#allocation3], 0  ;;  %v188_v3 = vlaneseq  ;;  %v1637_v4 = vmov 0.0|0.0   ;;  %vm1638_vm0 = vmmov 0   ;;  %v1639_v9 = vmov 0.0   ;;  %s1640_s29 = smov 64   ;;  %s2056_s0 = inlined_call_operand.vmem [shape: f32[64,64], index: 0, kind: input, shape index: {}]   ;;  %s2057_s1 = inlined_call_operand.vmem [shape: f32[64,96], index: 1, kind: input, shape index: {}]   ;;  %s2058_s2 = inlined_call_operand.vmem [shape: f32[64,96], index: 2, kind: input, shape index: {}]   ;;  %s2059_s3 = inlined_call_operand.vmem [shape: f32[8,96], index: 3, kind: input, shape index: {}]   ;;  %s2060_s4 = inlined_call_operand.vmem [shape: f32[8,32], index: 4, kind: input, shape index: {}]   ;;  %s2061_s5 = inlined_call_operand.hbm [shape: f32[32,64], index: 5, kind: output, shape index: {0}]   ;;  %s2062_s6 = inlined_call_operand.hbm [shape: f32[8,32], index: 6, kind: output, shape index: {1}]  }
   0x1   :  { %v32_v0 = vld [vmem:[%s2057_s1] sm:$0xff]  ;;  %v33_v1 = vld [vmem:[%s2057_s1 + $0x8] sm:$0xff]  ;;  %1436 = vmatprep.subr.bf16.mxu1 %v1637_v4  ;;  %v34_v7 = vld [vmem:[%s2057_s1 + $0x10] sm:$0xff]  ;;  %1284 = vmatprep.mubr.msk.f32.mxu1 %vm1638_vm0, %v1639_v9  ;;  %vm40_vm1 = vcmask 523264  }
   0x2   :  { %v179_v2 = vld [vmem:[%s2058_s2] sm:$0xff]  ;;  %v1420_v5 = vpack.c.bf16 %v33_v1, %v32_v0  ;;  %v180_v6 = vld [vmem:[%s2058_s2 + $0x8] sm:$0xff]  ;;  %v35_v8 = vld [vmem:[%s2057_s1 + $0x18] sm:$0xff]  ;;  %v189_v15 = vshrl.u32 %v188_v3, 7  ;;  %v191_v16 = vand.u32 127, %v188_v3 }
   0x3   :  { %v1702_v10 = vpack.c.bf16 %v180_v6, %v179_v2  ;;  %v1424_v11 = vpack.c.bf16 %v35_v8, %v34_v7  ;;  %v181_v12 = vld [vmem:[%s2058_s2 + $0x10] sm:$0xff]  ;;  %v182_v13 = vld [vmem:[%s2058_s2 + $0x18] sm:$0xff]  ;;  %v36_v14 = vld [vmem:[%s2057_s1 + $0x20] sm:$0xff] }
   0x4   :  { %1421 = vmatprep.subr.bf16.mxu0 %v1420_v5  ;;  %v37_v17 = vld [vmem:[%s2057_s1 + $0x28] sm:$0xff]  ;;  %v1717_v18 = vpack.c.bf16 %v182_v13, %v181_v12  ;;  %v183_v19 = vld [vmem:[%s2058_s2 + $0x20] sm:$0xff]  ;;  %vm192_vm2 = vcmp.lt.s32.totalorder %v189_v15, 4  ;;  %vm193_vm3 = vcmp.lt.s32.totalorder %v191_v16, 32  ;;  %v38_v22 = vld [vmem:[%s2057_s1 + $0x30] sm:$0xff]  ;;  %vm195_vm5 = vcmp.ge.s32.totalorder %v189_v15, 4 }
   0x5   :  { %1438 = vmatpush3.bf16.msra.mxu1 %v1702_v10  ;;  %1423 = vmatpush3.bf16.msra.mxu0 %v1420_v5  ;;  %v184_v20 = vld [vmem:[%s2058_s2 + $0x28] sm:$0xff]  ;;  %v1428_v21 = vpack.c.bf16 %v37_v17, %v36_v14  ;;  %v24_v23 = vld [vmem:[%s2056_s0] sm:$0xff]  ;;  %vm1732_vm4 = vmand %vm192_vm2, %vm193_vm3  ;;  %vm196_vm6 = vcmp.ge.s32.totalorder %v191_v16, 32 }
   0x6   :  { %1439 = vmatprep.subr.bf16.mxu1 %v1637_v4  ;;  %1425 = vmatprep.subr.bf16.mxu0 %v1424_v11  ;;  %v39_v25 = vld [vmem:[%s2057_s1 + $0x38] sm:$0xff]  ;;  %vm1740_vm7 = vmand %vm195_vm5, %vm196_vm6  ;;  %v187_v27 = vld [vmem:[%s2060_s4] sm:$0xff]  ;;  %v1749_v28 = vpack.c.bf16 %v184_v20, %v183_v19 }
   0x7   :  { %1256 = vmatprep.mubr.msk.f32.mxu0 %vm40_vm1, %v24_v23  ;;  %282 = vrot.lane.b32.xlu0 %v187_v27, %s1640_s29 }
   0x9   :  { %1441 = vmatpush3.bf16.msra.mxu1 %v1717_v18  ;;  %1427 = vmatpush3.bf16.msra.mxu0 %v1424_v11 }
   0xa   :  { %13 = vsyncpa [#allocation5], 0  ;;  %1442 = vmatprep.subr.bf16.mxu1 %v1637_v4  ;;  %1429 = vmatprep.subr.bf16.mxu0 %v1428_v21  ;;  %v1432_v29 = vpack.c.bf16 %v39_v25, %v38_v22  ;;  %v185_v30 = vld [vmem:[%s2058_s2 + $0x30] sm:$0xff]  ;;  %v186_v31 = vld [vmem:[%s2058_s2 + $0x38] sm:$0xff]  ;;  %s1641_s22 = smov 96   ;;  %vm309_vm9 = vcmask 261120  }
   0xb   :  { %vm198_vm8 = vmor %vm1732_vm4, %vm1740_vm7  ;;  %v1763_v32 = vpack.c.bf16 %v186_v31, %v185_v30  ;;  %v25_v35 = vld [vmem:[%s2056_s0 + $0x8] sm:$0xff]  ;;  %v1805_v42 = vld [vmem:[%s2059_s3] sm:$0xff]  ;;  %vm1088_vm10 = vcmask 1043456   ;;  %s1643_s24 = smov [#allocation2]  }
   0xc   :  { %v1766_v33 = vsel %vm198_vm8, 1.0, %v1639_v9  ;;  %v26_v53 = vld [vmem:[%s2056_s0 + $0x10] sm:$0xff]  ;;  %v27_v54 = vld [vmem:[%s2056_s0 + $0x18] sm:$0xff]  ;;  %v28_v55 = vld [vmem:[%s2056_s0 + $0x20] sm:$0xff]  ;;  %s1103_s25 = sshll.u32 %s1643_s24, 4  ;;  %s2021_s25 = int_to_ptr.vmem [resolvable:$true] %s1103_s25 }
   0xd   :  { %1444 = vmatpush3.bf16.msra.mxu1 %v1749_v28  ;;  %1431 = vmatpush3.bf16.msra.mxu0 %v1428_v21  ;;  %v200_v34 = vmul.f32 0.0, %v1766_v33  ;;  %v29_v56 = vld [vmem:[%s2056_s0 + $0x28] sm:$0xff]  ;;  %v30_v57 = vld [vmem:[%s2056_s0 + $0x30] sm:$0xff]  ;;  %v31_v58 = vld [vmem:[%s2056_s0 + $0x38] sm:$0xff]  ;;  %s1642_s0 = smov [#allocation4]  }
   0xe   :  { %1445 = vmatprep.subr.bf16.mxu1 %v1637_v4  ;;  %1433 = vmatprep.subr.bf16.mxu0 %v1432_v29  ;;  %s1116_s23 = sshll.u32 %s1642_s0, 4  ;;  %s1117_s23 = int_to_ptr.vmem [resolvable:$true] %s1116_s23 }
   0xf   :  { %s1589_s26 = scalar_lea.vmem %s1117_s23, 128  ;;  %p1594_p1 = scmp.lt.s32.totalorder %s1117_s23, %s1117_s23 }
  0x10   :  { %p1590_p0 = scmp.ne.s32.totalorder %s1117_s23, %s1589_s26  ;;  %p1595_p2 = scmp.lt.s32.totalorder %s1589_s26, %s1589_s26 }
  0x11   :  { %1447 = vmatpush3.bf16.msra.mxu1 %v1763_v32  ;;  %1435 = vmatpush3.bf16.msra.mxu0 %v1432_v29 }
  0x12   :  { %1448 = vmatprep.subr.bf16.mxu0 %v1637_v4  ;;  %1460 = vmatprep.subr.bf16.mxu1 %v1637_v4  ;;  %p1596_p3 = por %p1595_p2, %p1594_p1 }
  0x14   :  { %1285 = vmatmul.mubr.msk.f32.vlgmr.msra.gmra.mrb[0].mxu1 %vm40_vm1, %v200_v34  ;;  %1257 = vmatmul.mubr.msk.f32.vlgmr.msra.gmra.mrb[0].mxu0 %vm40_vm1, %v25_v35  ;;  %p1597_p4 = pnand %p1596_p3, %p1590_p0 }
  0x15   :  { %1450 = vmatpush3.bf16.msra.mxu0 %v1702_v10  ;;  %1462 = vmatpush3.bf16.msra.mxu1 %v1702_v10 }
  0x16   :  { %1451 = vmatprep.subr.bf16.mxu0 %v1637_v4  ;;  %1463 = vmatprep.subr.bf16.mxu1 %v1637_v4 }
  0x17   :  { %1322 = vmatprep.mubr.msk.f32.mxu1 %vm1638_vm0, %v1639_v9  ;;  %1259 = vmatprep.mubr.msk.f32.mxu0 %vm40_vm1, %v26_v53 }
  0x18   :  { %1260 = vmatmul.mubr.msk.f32.gmra.mrb[2].mxu0 %vm40_vm1, %v27_v54 }
  0x19   :  { %1453 = vmatpush3.bf16.msra.mxu0 %v1717_v18  ;;  %1465 = vmatpush3.bf16.msra.mxu1 %v1717_v18 }
  0x1a   :  { %1454 = vmatprep.subr.bf16.mxu0 %v1637_v4  ;;  %1466 = vmatprep.subr.bf16.mxu1 %v1637_v4 }
  0x1b   :  { %1262 = vmatprep.mubr.msk.f32.mxu0 %vm40_vm1, %v28_v55 }
  0x1c   :  { %1263 = vmatmul.mubr.msk.f32.gmra.mrb[4].mxu0 %vm40_vm1, %v29_v56 }
  0x1d   :  { %1456 = vmatpush3.bf16.msra.mxu0 %v1749_v28  ;;  %1468 = vmatpush3.bf16.msra.mxu1 %v1749_v28 }
  0x1e   :  { %1457 = vmatprep.subr.bf16.mxu0 %v1637_v4  ;;  %1469 = vmatprep.subr.bf16.mxu1 %v1637_v4 }
  0x1f   :  { %1265 = vmatprep.mubr.msk.f32.mxu0 %vm40_vm1, %v30_v57 }
  0x20   :  { %1266 = vmatmul.mubr.msk.f32.gmra.mrb[6].mxu0 %vm40_vm1, %v31_v58 }
  0x21   :  { %1459 = vmatpush3.bf16.msra.mxu0 %v1763_v32  ;;  %1471 = vmatpush3.bf16.msra.mxu1 %v1763_v32 }
  0x22   :  { %1472 = vmatprep.subr.bf16.mxu0 %v1637_v4  ;;  %1484 = vmatprep.subr.bf16.mxu1 %v1637_v4 }
  0x23   :  { %1303 = vmatprep.mubr.msk.f32.mxu0 %vm1638_vm0, %v1639_v9 }
  0x79   :  { %v1796_v36 = vpop.permute.xlu0 %282 }
  0xe7   :  { %v270_v37 = vpop.f32.mrb[0].mxu1  ;;  %v1798_v38 = vpop.f32.mrb[0].mxu0 }
  0xe8   :  { %v285_v39 = vadd.f32 %v1796_v36, %v270_v37  ;;  %v1286_v40 = vpop.f32.mrb[1].mxu1  ;;  %v131_v41 = vpop.f32.mrb[1].mxu0  ;;  %v172_v16 = vadd.f32 %v1798_v38, %v1805_v42 }
  0xe9   :  { %v171_v43 = vadd.f32 %v1805_v42, %v131_v41 }
  0xea   :  { %287 = vrot.lane.b32.xlu0 %v285_v39, %s1640_s29 }
  0xeb   :  { %v274_v44 = vadd.f32 %v270_v37, %v171_v43  ;;  %v1840_v1 = vpop.f32.mrb[2].mxu0 }
  0xec   :  { %v141_v2 = vpop.f32.mrb[3].mxu0 }
  0xed   :  { %v1137_v45 = vmul.f32 -1.442695, %v274_v44  ;;  %v173_v44 = vadd.f32 %v1805_v42, %v141_v2 }
  0xef   :  { %1541 = vpow2.f32 %v1137_v45  ;;  %v1842_v3 = vpop.f32.mrb[4].mxu0 }
  0xf0   :  { %v1844_v5 = vpop.f32.mrb[5].mxu0 }
  0xf3   :  { %v1846_v6 = vpop.f32.mrb[6].mxu0 }
  0xf4   :  { %v1848_v7 = vpop.f32.mrb[7].mxu0 }
  0xf9   :  { %v1542_v46 = vpop.eup %1541 }
  0xfa   :  { %v278_v47 = vadd.f32 1.0, %v1542_v46 }
  0xfc   :  { %1543 = vrcp.f32 %v278_v47 }
 0x106   :  { %v1544_v48 = vpop.eup %1543 }
 0x107   :  { %v297_v60 = vsub.f32 1.0, %v1544_v48  ;;  %v303_v62 = vmul.f32 0.0, %v1544_v48 }
 0x15c   :  { %v288_v49 = vpop.permute.xlu0 %287 }
 0x15d   :  { %v290_v50 = vmul.f32 %v1544_v48, %v288_v49 }
 0x15f   :  { %292 = vrot.lane.b32.xlu1 %v290_v50, %s1640_s29 }
 0x1d1   :  { %v293_v51 = vpop.permute.xlu1 %292 }
 0x1d2   :  { %v295_v52 = vadd.f32 %v293_v51, %v171_v43 }
 0x1d4   :  { %1545 = vtanh.f32 %v295_v52 }
 0x1de   :  { %v1546_v59 = vpop.eup %1545 }
 0x1df   :  { %299 = vrot.lane.b32.xlu1 %v1546_v59, %s1641_s22 }
 0x251   :  { %v300_v61 = vpop.permute.xlu1 %299 }
 0x252   :  { %v302_v63 = vmul.f32 %v300_v61, %v297_v60 }
 0x254   :  { %v1836_v0 = vadd.f32 %v303_v62, %v302_v63 }
 0x256   :  { %306 = vrot.lane.b32.xlu0 %v1836_v0, %s1641_s22 }
 0x2c8   :  { %v1850_v8 = vpop.permute.xlu0 %306 }
 0x2c9   :  { %v310_v11 = vsel %vm309_vm9, %v1850_v8, %v1836_v0 }
 0x2ca   :  { %v311_v12 = vmul.f32 %v310_v11, %v1766_v33 }
 0x2cc   :  { %1304 = vmatmul.mubr.msk.f32.vlgmr.msra.gmra.mrb[8].mxu0 %vm40_vm1, %v311_v12  ;;  %v174_v12 = vadd.f32 %v1840_v1, %v1805_v42 }
 0x2cd   :  { %1474 = vmatpush3.bf16.msra.mxu0 %v1702_v10  ;;  %1341 = vmatprep.mubr.msk.f32.mxu0 %vm1638_vm0, %v1639_v9 }
 0x2ce   :  { %1475 = vmatprep.subr.bf16.mxu0 %v1637_v4 }
 0x2d1   :  { %1477 = vmatpush3.bf16.msra.mxu0 %v1717_v18 }
 0x2d2   :  { %1478 = vmatprep.subr.bf16.mxu0 %v1637_v4 }
 0x2d5   :  { %1480 = vmatpush3.bf16.msra.mxu0 %v1749_v28 }
 0x2d6   :  { %1481 = vmatprep.subr.bf16.mxu0 %v1637_v4 }
 0x2d9   :  { %1483 = vmatpush3.bf16.msra.mxu0 %v1763_v32 }
 0x2da   :  { %1496 = vmatprep.subr.bf16.mxu0 %v1637_v4 }
 0x39f   :  { %v381_v13 = vpop.f32.mrb[8].mxu0 }
 0x3a0   :  { %v392_v14 = vadd.f32 %v381_v13, %v1796_v36  ;;  %v1305_v15 = vpop.f32.mrb[9].mxu0  ;;  %v385_v17 = vadd.f32 %v381_v13, %v172_v16 }
 0x3a2   :  { %394 = vrot.lane.b32.xlu1 %v392_v14, %s1640_s29  ;;  %v1139_v19 = vmul.f32 -1.442695, %v385_v17 }
 0x3a4   :  { %1547 = vpow2.f32 %v1139_v19 }
 0x3ae   :  { %v1548_v20 = vpop.eup %1547 }
 0x3af   :  { %v389_v21 = vadd.f32 1.0, %v1548_v20 }
 0x3b1   :  { %1549 = vrcp.f32 %v389_v21 }
 0x3bb   :  { %v1550_v22 = vpop.eup %1549 }
 0x3bc   :  { %v404_v29 = vsub.f32 1.0, %v1550_v22  ;;  %v410_v31 = vmul.f32 %v1550_v22, %v1836_v0 }
 0x414   :  { %v395_v23 = vpop.permute.xlu1 %394 }
 0x415   :  { %v397_v24 = vmul.f32 %v1550_v22, %v395_v23 }
 0x417   :  { %399 = vrot.lane.b32.xlu0 %v397_v24, %s1640_s29 }
 0x489   :  { %v400_v25 = vpop.permute.xlu0 %399 }
 0x48a   :  { %v402_v26 = vadd.f32 %v400_v25, %v172_v16 }
 0x48c   :  { %1551 = vtanh.f32 %v402_v26 }
 0x496   :  { %v1552_v27 = vpop.eup %1551 }
 0x497   :  { %406 = vrot.lane.b32.xlu1 %v1552_v27, %s1641_s22 }
 0x509   :  { %v407_v30 = vpop.permute.xlu1 %406 }
 0x50a   :  { %v409_v34 = vmul.f32 %v407_v30, %v404_v29 }
 0x50c   :  { %v1874_v35 = vadd.f32 %v410_v31, %v409_v34 }
 0x50e   :  { %413 = vrot.lane.b32.xlu0 %v1874_v35, %s1641_s22 }
 0x580   :  { %v1878_v37 = vpop.permute.xlu0 %413 }
 0x581   :  { %v416_v38 = vsel %vm309_vm9, %v1878_v37, %v1874_v35 }
 0x582   :  { %v417_v39 = vmul.f32 %v416_v38, %v1766_v33 }
 0x584   :  { %1323 = vmatmul.mubr.msk.f32.vlgmr.msra.gmra.mrb[2].mxu1 %vm40_vm1, %v417_v39 }
 0x585   :  { %1486 = vmatpush3.bf16.msra.mxu1 %v1702_v10  ;;  %1360 = vmatprep.mubr.msk.f32.mxu1 %vm1638_vm0, %v1639_v9 }
 0x586   :  { %1487 = vmatprep.subr.bf16.mxu1 %v1637_v4 }
 0x589   :  { %1489 = vmatpush3.bf16.msra.mxu1 %v1717_v18 }
 0x58a   :  { %1490 = vmatprep.subr.bf16.mxu1 %v1637_v4 }
 0x58d   :  { %1492 = vmatpush3.bf16.msra.mxu1 %v1749_v28 }
 0x58e   :  { %1493 = vmatprep.subr.bf16.mxu1 %v1637_v4 }
 0x591   :  { %1495 = vmatpush3.bf16.msra.mxu1 %v1763_v32 }
 0x592   :  { %1508 = vmatprep.subr.bf16.mxu1 %v1637_v4 }
 0x657   :  { %v487_v40 = vpop.f32.mrb[2].mxu1 }
 0x658   :  { %v498_v41 = vadd.f32 %v487_v40, %v1796_v36  ;;  %v1324_v43 = vpop.f32.mrb[3].mxu1  ;;  %v491_v45 = vadd.f32 %v487_v40, %v173_v44  ;;  %v175_v40 = vadd.f32 %v1805_v42, %v1844_v5 }
 0x65a   :  { %500 = vrot.lane.b32.xlu1 %v498_v41, %s1640_s29  ;;  %v1141_v46 = vmul.f32 -1.442695, %v491_v45 }
 0x65c   :  { %1553 = vpow2.f32 %v1141_v46 }
 0x666   :  { %v1554_v47 = vpop.eup %1553 }
 0x667   :  { %v495_v48 = vadd.f32 1.0, %v1554_v47 }
 0x669   :  { %1555 = vrcp.f32 %v495_v48 }
 0x673   :  { %v1556_v49 = vpop.eup %1555 }
 0x674   :  { %v510_v55 = vsub.f32 1.0, %v1556_v49  ;;  %v516_v57 = vmul.f32 %v1556_v49, %v1874_v35 }
 0x6cc   :  { %v501_v50 = vpop.permute.xlu1 %500 }
 0x6cd   :  { %v503_v51 = vmul.f32 %v1556_v49, %v501_v50 }
 0x6cf   :  { %505 = vrot.lane.b32.xlu0 %v503_v51, %s1640_s29 }
 0x741   :  { %v506_v52 = vpop.permute.xlu0 %505 }
 0x742   :  { %v508_v53 = vadd.f32 %v506_v52, %v173_v44 }
 0x744   :  { %1557 = vtanh.f32 %v508_v53 }
 0x74e   :  { %v1558_v54 = vpop.eup %1557 }
 0x74f   :  { %512 = vrot.lane.b32.xlu1 %v1558_v54, %s1641_s22 }
 0x7c1   :  { %v513_v56 = vpop.permute.xlu1 %512 }
 0x7c2   :  { %v515_v58 = vmul.f32 %v513_v56, %v510_v55 }
 0x7c4   :  { %v1901_v59 = vadd.f32 %v516_v57, %v515_v58 }
 0x7c6   :  { %519 = vrot.lane.b32.xlu0 %v1901_v59, %s1641_s22 }
 0x838   :  { %v1905_v60 = vpop.permute.xlu0 %519 }
 0x839   :  { %v522_v61 = vsel %vm309_vm9, %v1905_v60, %v1901_v59 }
 0x83a   :  { %v523_v62 = vmul.f32 %v522_v61, %v1766_v33 }
 0x83c   :  { %1342 = vmatmul.mubr.msk.f32.vlgmr.msra.gmra.mrb[10].mxu0 %vm40_vm1, %v523_v62 }
 0x83d   :  { %1498 = vmatpush3.bf16.msra.mxu0 %v1702_v10  ;;  %1379 = vmatprep.mubr.msk.f32.mxu0 %vm1638_vm0, %v1639_v9 }
 0x83e   :  { %1499 = vmatprep.subr.bf16.mxu0 %v1637_v4 }
 0x841   :  { %1501 = vmatpush3.bf16.msra.mxu0 %v1717_v18 }
 0x842   :  { %1502 = vmatprep.subr.bf16.mxu0 %v1637_v4 }
 0x845   :  { %1504 = vmatpush3.bf16.msra.mxu0 %v1749_v28 }
 0x846   :  { %1505 = vmatprep.subr.bf16.mxu0 %v1637_v4 }
 0x849   :  { %1507 = vmatpush3.bf16.msra.mxu0 %v1763_v32 }
 0x84a   :  { %1520 = vmatprep.subr.bf16.mxu0 %v1637_v4 }
 0x90f   :  { %v593_v63 = vpop.f32.mrb[10].mxu0 }
 0x910   :  { %v604_v2 = vadd.f32 %v593_v63, %v1796_v36  ;;  %v1343_v11 = vpop.f32.mrb[11].mxu0  ;;  %v597_v13 = vadd.f32 %v593_v63, %v174_v12 }
 0x912   :  { %606 = vrot.lane.b32.xlu1 %v604_v2, %s1640_s29  ;;  %v1143_v14 = vmul.f32 -1.442695, %v597_v13 }
 0x914   :  { %1559 = vpow2.f32 %v1143_v14 }
 0x91e   :  { %v1560_v15 = vpop.eup %1559 }
 0x91f   :  { %v601_v16 = vadd.f32 1.0, %v1560_v15 }
 0x921   :  { %1561 = vrcp.f32 %v601_v16 }
 0x92b   :  { %v1562_v17 = vpop.eup %1561 }
 0x92c   :  { %v616_v24 = vsub.f32 1.0, %v1562_v17  ;;  %v622_v1 = vmul.f32 %v1562_v17, %v1901_v59 }
 0x984   :  { %v607_v19 = vpop.permute.xlu1 %606 }
 0x985   :  { %v609_v20 = vmul.f32 %v1562_v17, %v607_v19 }
 0x987   :  { %611 = vrot.lane.b32.xlu0 %v609_v20, %s1640_s29 }
 0x9f9   :  { %v612_v21 = vpop.permute.xlu0 %611 }
 0x9fa   :  { %v614_v22 = vadd.f32 %v612_v21, %v174_v12 }
 0x9fc   :  { %1563 = vtanh.f32 %v614_v22 }
 0xa06   :  { %v1564_v23 = vpop.eup %1563 }
 0xa07   :  { %618 = vrot.lane.b32.xlu1 %v1564_v23, %s1641_s22 }
 0xa79   :  { %v619_v25 = vpop.permute.xlu1 %618 }
 0xa7a   :  { %v621_v26 = vmul.f32 %v619_v25, %v616_v24 }
 0xa7c   :  { %v1929_v27 = vadd.f32 %v622_v1, %v621_v26  ;;  %v1064_v1 = vrot.slane %v1901_v59, 4 }
 0xa7e   :  { %625 = vrot.lane.b32.xlu0 %v1929_v27, %s1641_s22 }
 0xaf0   :  { %v1933_v29 = vpop.permute.xlu0 %625 }
 0xaf1   :  { %v628_v30 = vsel %vm309_vm9, %v1933_v29, %v1929_v27 }
 0xaf2   :  { %v629_v31 = vmul.f32 %v628_v30, %v1766_v33  ;;  %v1061_v30 = vrot.slane %v1929_v27, 4 }
 0xaf4   :  { %1361 = vmatmul.mubr.msk.f32.vlgmr.msra.gmra.mrb[4].mxu1 %vm40_vm1, %v629_v31 }
 0xaf5   :  { %1510 = vmatpush3.bf16.msra.mxu1 %v1702_v10  ;;  %1398 = vmatprep.mubr.msk.f32.mxu1 %vm1638_vm0, %v1639_v9 }
 0xaf6   :  { %1511 = vmatprep.subr.bf16.mxu1 %v1637_v4 }
 0xaf9   :  { %1513 = vmatpush3.bf16.msra.mxu1 %v1717_v18 }
 0xafa   :  { %1514 = vmatprep.subr.bf16.mxu1 %v1637_v4 }
 0xafd   :  { %1516 = vmatpush3.bf16.msra.mxu1 %v1749_v28 }
 0xafe   :  { %1517 = vmatprep.subr.bf16.mxu1 %v1637_v4 }
 0xb01   :  { %1519 = vmatpush3.bf16.msra.mxu1 %v1763_v32 }
 0xbc7   :  { %v699_v34 = vpop.f32.mrb[4].mxu1 }
 0xbc8   :  { %v710_v38 = vadd.f32 %v699_v34, %v1796_v36  ;;  %v1362_v39 = vpop.f32.mrb[5].mxu1  ;;  %v703_v41 = vadd.f32 %v699_v34, %v175_v40 }
 0xbca   :  { %712 = vrot.lane.b32.xlu1 %v710_v38, %s1640_s29  ;;  %v1145_v43 = vmul.f32 -1.442695, %v703_v41 }
 0xbcc   :  { %1565 = vpow2.f32 %v1145_v43 }
 0xbd6   :  { %v1566_v44 = vpop.eup %1565 }
 0xbd7   :  { %v707_v45 = vadd.f32 1.0, %v1566_v44 }
 0xbd9   :  { %1567 = vrcp.f32 %v707_v45 }
 0xbe3   :  { %v1568_v46 = vpop.eup %1567 }
 0xbe4   :  { %v722_v52 = vsub.f32 1.0, %v1568_v46  ;;  %v728_v5 = vmul.f32 %v1568_v46, %v1929_v27  ;;  %v177_v27 = vadd.f32 %v1805_v42, %v1848_v7 }
 0xc3c   :  { %v713_v47 = vpop.permute.xlu1 %712 }
 0xc3d   :  { %v715_v48 = vmul.f32 %v1568_v46, %v713_v47 }
 0xc3f   :  { %717 = vrot.lane.b32.xlu0 %v715_v48, %s1640_s29 }
 0xcb1   :  { %v718_v49 = vpop.permute.xlu0 %717 }
 0xcb2   :  { %v720_v50 = vadd.f32 %v718_v49, %v175_v40 }
 0xcb4   :  { %1569 = vtanh.f32 %v720_v50 }
 0xcbe   :  { %v1570_v51 = vpop.eup %1569 }
 0xcbf   :  { %724 = vrot.lane.b32.xlu1 %v1570_v51, %s1641_s22 }
 0xd31   :  { %v725_v53 = vpop.permute.xlu1 %724 }
 0xd32   :  { %v727_v54 = vmul.f32 %v725_v53, %v722_v52 }
 0xd34   :  { %v729_v55 = vadd.f32 %v728_v5, %v727_v54 }
 0xd36   :  { %731 = vrot.lane.b32.xlu0 %v729_v55, %s1641_s22  ;;  %v1058_v15 = vrot.slane %v729_v55, 4 }
 0xd38   :  { %v1060_v20 = vsel %vm309_vm9, %v1933_v29, %v1058_v15 }
 0xd39   :  { %v1080_v23 = vrot.slane %v1060_v20, 4 }
 0xda8   :  { %v732_v56 = vpop.permute.xlu0 %731 }
 0xda9   :  { %v734_v57 = vsel %vm309_vm9, %v732_v56, %v729_v55  ;;  %v1063_v39 = vsel %vm309_vm9, %v732_v56, %v1061_v30 }
 0xdaa   :  { %v735_v58 = vmul.f32 %v734_v57, %v1766_v33 }
 0xdac   :  { %1380 = vmatmul.mubr.msk.f32.vlgmr.msra.gmra.mrb[12].mxu0 %vm40_vm1, %v735_v58 }
 0xdad   :  { %1522 = vmatpush3.bf16.msra.mxu0 %v1702_v10  ;;  %1417 = vmatprep.mubr.msk.f32.mxu0 %vm1638_vm0, %v1639_v9  ;;  %v176_v9 = vadd.f32 %v1842_v3, %v1805_v42 }
 0xdae   :  { %1523 = vmatprep.subr.bf16.mxu0 %v1637_v4 }
 0xdb1   :  { %1525 = vmatpush3.bf16.msra.mxu0 %v1717_v18 }
 0xdb2   :  { %1526 = vmatprep.subr.bf16.mxu0 %v1637_v4 }
 0xdb5   :  { %1528 = vmatpush3.bf16.msra.mxu0 %v1749_v28 }
 0xdb6   :  { %1529 = vmatprep.subr.bf16.mxu0 %v1637_v4 }
 0xdb9   :  { %1531 = vmatpush3.bf16.msra.mxu0 %v1763_v32 }
 0xe7f   :  { %v805_v61 = vpop.f32.mrb[12].mxu0 }
 0xe80   :  { %v816_v62 = vadd.f32 %v805_v61, %v1796_v36  ;;  %v1381_v63 = vpop.f32.mrb[13].mxu0  ;;  %v809_v10 = vadd.f32 %v805_v61, %v176_v9 }
 0xe82   :  { %818 = vrot.lane.b32.xlu1 %v816_v62, %s1640_s29  ;;  %v1147_v2 = vmul.f32 -1.442695, %v809_v10 }
 0xe84   :  { %1571 = vpow2.f32 %v1147_v2 }
 0xe8e   :  { %v1572_v18 = vpop.eup %1571 }
 0xe8f   :  { %v813_v11 = vadd.f32 1.0, %v1572_v18 }
 0xe91   :  { %1573 = vrcp.f32 %v813_v11 }
 0xe9b   :  { %v1574_v28 = vpop.eup %1573 }
 0xe9c   :  { %v828_v16 = vsub.f32 1.0, %v1574_v28  ;;  %v834_v17 = vmul.f32 %v1574_v28, %v729_v55 }
 0xef4   :  { %v819_v12 = vpop.permute.xlu1 %818 }
 0xef5   :  { %v821_v4 = vmul.f32 %v1574_v28, %v819_v12 }
 0xef7   :  { %823 = vrot.lane.b32.xlu0 %v821_v4, %s1640_s29 }
 0xf69   :  { %v824_v32 = vpop.permute.xlu0 %823 }
 0xf6a   :  { %v826_v13 = vadd.f32 %v824_v32, %v176_v9  ;;  %v178_v9 = vadd.f32 %v1846_v6, %v1805_v42 }
 0xf6c   :  { %1575 = vtanh.f32 %v826_v13 }
 0xf76   :  { %v1576_v14 = vpop.eup %1575 }
 0xf77   :  { %830 = vrot.lane.b32.xlu1 %v1576_v14, %s1641_s22 }
 0xfe9   :  { %v831_v3 = vpop.permute.xlu1 %830 }
 0xfea   :  { %v833_v19 = vmul.f32 %v831_v3, %v828_v16 }
 0xfec   :  { %v835_v21 = vadd.f32 %v834_v17, %v833_v19 }
 0xfee   :  { %v1055_v22 = vrot.slane %v835_v21, 4  ;;  %837 = vrot.lane.b32.xlu0 %v835_v21, %s1641_s22 }
 0xff0   :  { %v1057_v24 = vsel %vm309_vm9, %v1905_v60, %v1055_v22  ;;  %v1073_v22 = vrot.slane %v1836_v0, 4 }
 0xff1   :  { %v1090_v25 = vsel %vm1088_vm10, %v1057_v24, %v1080_v23  ;;  %v1067_v23 = vrot.slane %v1874_v35, 4 }
 0xff2   :  { %1094 = vst.msk [vmem:[#allocation2 + $0x8] sm:$0xff] %vm40_vm1, %v1090_v25 }
0x1060   :  { %v838_v26 = vpop.permute.xlu0 %837 }
0x1061   :  { %v840_v29 = vsel %vm309_vm9, %v838_v26, %v835_v21  ;;  %v1066_v31 = vsel %vm309_vm9, %v838_v26, %v1064_v1 }
0x1062   :  { %v841_v34 = vmul.f32 %v840_v29, %v1766_v33  ;;  %v1083_v38 = vrot.slane %v1066_v31, 4 }
0x1064   :  { %v1091_v60 = vsel %vm1088_vm10, %v1063_v39, %v1083_v38  ;;  %1399 = vmatmul.mubr.msk.f32.vlgmr.msra.gmra.mrb[6].mxu1 %vm40_vm1, %v841_v34 }
0x1065   :  { %1095 = vst.msk [vmem:[#allocation2 + $0x10] sm:$0xff] %vm40_vm1, %v1091_v60 }
0x1137   :  { %v911_v40 = vpop.f32.mrb[6].mxu1 }
0x1138   :  { %v922_v59 = vadd.f32 %v911_v40, %v1796_v36  ;;  %v1400_v41 = vpop.f32.mrb[7].mxu1  ;;  %v915_v43 = vadd.f32 %v911_v40, %v177_v27 }
0x113a   :  { %924 = vrot.lane.b32.xlu1 %v922_v59, %s1640_s29  ;;  %v1149_v44 = vmul.f32 -1.442695, %v915_v43 }
0x113c   :  { %1577 = vpow2.f32 %v1149_v44 }
0x1146   :  { %v1578_v45 = vpop.eup %1577 }
0x1147   :  { %v919_v46 = vadd.f32 1.0, %v1578_v45 }
0x1149   :  { %1579 = vrcp.f32 %v919_v46 }
0x1153   :  { %v1580_v47 = vpop.eup %1579 }
0x1154   :  { %v934_v53 = vsub.f32 1.0, %v1580_v47  ;;  %v940_v7 = vmul.f32 %v1580_v47, %v835_v21 }
0x11ac   :  { %v925_v48 = vpop.permute.xlu1 %924 }
0x11ad   :  { %v927_v49 = vmul.f32 %v1580_v47, %v925_v48 }
0x11af   :  { %929 = vrot.lane.b32.xlu0 %v927_v49, %s1640_s29 }
0x1221   :  { %v930_v50 = vpop.permute.xlu0 %929 }
0x1222   :  { %v932_v51 = vadd.f32 %v930_v50, %v177_v27 }
0x1224   :  { %1581 = vtanh.f32 %v932_v51 }
0x122e   :  { %v1582_v52 = vpop.eup %1581 }
0x122f   :  { %936 = vrot.lane.b32.xlu1 %v1582_v52, %s1641_s22 }
0x12a1   :  { %v937_v5 = vpop.permute.xlu1 %936 }
0x12a2   :  { %v939_v54 = vmul.f32 %v937_v5, %v934_v53 }
0x12a4   :  { %v941_v55 = vadd.f32 %v940_v7, %v939_v54 }
0x12a6   :  { %943 = vrot.lane.b32.xlu0 %v941_v55, %s1641_s22  ;;  %v1052_v13 = vrot.slane %v941_v55, 4 }
0x12a8   :  { %v1054_v16 = vsel %vm309_vm9, %v1878_v37, %v1052_v13 }
0x12a9   :  { %v1077_v19 = vrot.slane %v1054_v16, 4 }
0x1318   :  { %v1998_v56 = vpop.permute.xlu0 %943 }
0x1319   :  { %v946_v57 = vsel %vm309_vm9, %v1998_v56, %v941_v55 }
0x131a   :  { %v947_v58 = vmul.f32 %v946_v57, %v1766_v33 }
0x131c   :  { %1418 = vmatmul.mubr.msk.f32.vlgmr.msra.gmra.mrb[14].mxu0 %vm40_vm1, %v947_v58 }
0x13ef   :  { %v1017_v61 = vpop.f32.mrb[14].mxu0 }
0x13f0   :  { %v1028_v62 = vadd.f32 %v1017_v61, %v1796_v36  ;;  %v1419_v63 = vpop.f32.mrb[15].mxu0  ;;  %v1021_v10 = vadd.f32 %v1017_v61, %v178_v9 }
0x13f2   :  { %1030 = vrot.lane.b32.xlu1 %v1028_v62, %s1640_s29  ;;  %v1151_v2 = vmul.f32 -1.442695, %v1021_v10 }
0x13f4   :  { %1583 = vpow2.f32 %v1151_v2 }
0x13fe   :  { %v1584_v18 = vpop.eup %1583 }
0x13ff   :  { %v1025_v11 = vadd.f32 1.0, %v1584_v18 }
0x1401   :  { %1585 = vrcp.f32 %v1025_v11 }
0x140b   :  { %v1586_v28 = vpop.eup %1585 }
0x140c   :  { %v1040_v14 = vsub.f32 1.0, %v1586_v28  ;;  %v1046_v6 = vmul.f32 %v1586_v28, %v941_v55 }
0x1464   :  { %v1031_v12 = vpop.permute.xlu1 %1030 }
0x1465   :  { %v1033_v33 = vmul.f32 %v1586_v28, %v1031_v12 }
0x1467   :  { %1035 = vrot.lane.b32.xlu0 %v1033_v33, %s1640_s29 }
0x14d9   :  { %v1036_v4 = vpop.permute.xlu0 %1035 }
0x14da   :  { %v1038_v32 = vadd.f32 %v1036_v4, %v178_v9 }
0x14dc   :  { %1587 = vtanh.f32 %v1038_v32 }
0x14e6   :  { %v1588_v36 = vpop.eup %1587 }
0x14e7   :  { %1042 = vrot.lane.b32.xlu1 %v1588_v36, %s1641_s22 }
0x1559   :  { %v1043_v42 = vpop.permute.xlu1 %1042 }
0x155a   :  { %v1045_v15 = vmul.f32 %v1043_v42, %v1040_v14 }
0x155c   :  { %v1047_v3 = vadd.f32 %v1046_v6, %v1045_v15 }
0x155e   :  { %v1049_v17 = vrot.slane %v1047_v3, 4  ;;  %1070 = vrot.lane.b32.xlu0 %v1047_v3, %s1641_s22 }
0x1560   :  { %v1051_v20 = vsel %vm309_vm9, %v1850_v8, %v1049_v17 }
0x1561   :  { %v1089_v21 = vsel %vm1088_vm10, %v1051_v20, %v1077_v19 }
0x1562   :  { %1093 = vst.msk [vmem:[#allocation2] sm:$0xff] %vm40_vm1, %v1089_v21 }
0x15d0   :  { %v1071_v37 = vpop.permute.xlu0 %1070 }
0x15d1   :  { %v1075_v24 = vsel %vm309_vm9, %v1071_v37, %v1073_v22  ;;  %1097 = vst.msk [vmem:[#allocation4] sm:$0xff] %vm309_vm9, %v1071_v37 }
0x15d2   :  { %v1086_v8 = vrot.slane %v1075_v24, 4 }
0x15d3   :  { %1600 = shalt.err (!%p1597_p4)
}
0x15d4   :  { %s1601_s29 = scalar_lea.hbm %s2062_s6, 128 }
0x15d5   :  { %p1602_p5 = scmp.ne.s32.totalorder %s2062_s6, %s1601_s29  ;;  %p1605_p6 = scmp.lt.u32.totalorder %s1601_s29, %s2062_s6 }
0x15d7   :  { %p1607_p7 = pnand %p1605_p6, %p1602_p5 }
0x15d9   :  { %1610 = shalt.err (!%p1607_p7)
}
0x15da   :  { %1119 = dma.vmem_to_hbm [thread:$0]  %s1117_s23, 128, %s2062_s6, [#allocation5]   ;;  %v1069_v0 = vsel %vm309_vm9, %v1998_v56, %v1067_v23 }
0x15db   :  { %v1092_v35 = vsel %vm1088_vm10, %v1069_v0, %v1086_v8  ;;  %s1611_s9 = scalar_lea.vmem %s2021_s25, 512  ;;  %p1616_p9 = scmp.lt.s32.totalorder %s2021_s25, %s2021_s25 }
0x15dc   :  { %1096 = vst.msk [vmem:[#allocation2 + $0x18] sm:$0xff] %vm40_vm1, %v1092_v35  ;;  %p1612_p8 = scmp.ne.s32.totalorder %s2021_s25, %s1611_s9  ;;  %p1617_p10 = scmp.lt.s32.totalorder %s1611_s9, %s1611_s9 }
0x15de   :  { %p1618_p11 = por %p1617_p10, %p1616_p9 }
0x15e0   :  { %p1619_p12 = pnand %p1618_p11, %p1612_p8 }
0x15e2   :  { %1622 = shalt.err (!%p1619_p12)
}
0x15e3   :  { %s1623_s12 = scalar_lea.hbm %s2061_s5, 512 }
0x15e4   :  { %p1624_p13 = scmp.ne.s32.totalorder %s2061_s5, %s1623_s12  ;;  %p1627_p0 = scmp.lt.u32.totalorder %s1623_s12, %s2061_s5 }
0x15e6   :  { %p1629_p1 = pnand %p1627_p0, %p1624_p13 }
0x15e8   :  { %1632 = shalt.err (!%p1629_p1)
}
0x15e9   :  { %s1644_s15 = smov 128   ;;  %s1645_s16 = smov 8  }
0x15ea   :  { %1109 = dma.vmem_to_hbm [thread:$0]  %s2021_s25, 512, %s2061_s5, [#allocation3], %s1644_s15, %s1644_s15, %s1645_s16  }
0x15eb   :  { %1633 = dma.done.wait [#allocation3], 512  }
0x15ec   :  { %1634 = vsyncadd [#allocation3], 4294966784 }
0x15ed   :  { %1635 = dma.done.wait [#allocation5], 128  }
0x15ee   :  { %1636 = vsyncadd [#allocation5], 4294967168 }
0x15ef   :  { %1126 = vsyncpa [#allocation3], 1 }
0x15f0   :  { %1127 = vsyncpa [#allocation5], 1 }

</bundles_post_ra>
